<compile_context>
chip_gen: v6e
topology: v6e:2x2x1
jax: 0.10.0
libtpu: 0.0.40
codegen_flags: <defaults>
</compile_context>

<pallas_src>
import functools
import math

import jax
import jax.numpy as jnp
from jax import lax
from jax.experimental import pallas as pl
from jax.experimental.pallas import tpu as pltpu


# ----------------------------------------------------------------------------
# Row-tiled Linear (matmul + bias) kernel: used for fc_q / fc_k / fc_v / fc_o.
# ----------------------------------------------------------------------------
def _linear_kernel(x_ref, w_ref, b_ref, o_ref):
    # x_ref: (tm, K)   w_ref: (K, N)   b_ref: (1, N)   o_ref: (tm, N)
    y = jnp.dot(x_ref[...], w_ref[...], preferred_element_type=jnp.float32)
    y = y + b_ref[...].astype(jnp.float32)
    o_ref[...] = y.astype(o_ref.dtype)


def _linear(x2d, w, b, *, tm):
    M, K = x2d.shape
    N = w.shape[1]
    # Clamp the row tile to the problem size; keep it a legal sublane multiple.
    tm = min(tm, M)
    if M % tm != 0:
        tm = math.gcd(M, tm)
    assert M % tm == 0 and (tm % 8 == 0 or tm == M), (M, tm)

    itemsize = jnp.dtype(x2d.dtype).itemsize
    cost = pl.CostEstimate(
        flops=2 * M * K * N,
        transcendentals=0,
        bytes_accessed=itemsize * (M * K + K * N + N + M * N),
    )
    return pl.pallas_call(
        _linear_kernel,
        out_shape=jax.ShapeDtypeStruct((M, N), x2d.dtype),
        grid_spec=pltpu.PrefetchScalarGridSpec(
            num_scalar_prefetch=0,
            grid=(M // tm,),
            in_specs=[
                pl.BlockSpec((tm, K), lambda i: (i, 0)),   # activations stream
                pl.BlockSpec((K, N), lambda i: (0, 0)),    # weight (VMEM-resident)
                pl.BlockSpec((1, N), lambda i: (0, 0)),    # bias   (VMEM-resident)
            ],
            out_specs=pl.BlockSpec((tm, N), lambda i: (i, 0)),
        ),
        compiler_params=pltpu.CompilerParams(
            dimension_semantics=("parallel",)),
        cost_estimate=cost,
    )(x2d, w, b.reshape(1, N))


# ----------------------------------------------------------------------------
# Fused attention core: per (batch, head, q-tile) block.
# ----------------------------------------------------------------------------
def _attention_body(q_ref, k_ref, v_ref, attn_ref, ctx_ref, inv_scale, mask=None):
    q = q_ref[...].astype(jnp.float32)          # (tq, Dh)
    k = k_ref[...].astype(jnp.float32)          # (Sk, Dh)
    # energy = Q @ K^T / sqrt(Dh)   (contract over Dh; f32 accumulation)
    energy = lax.dot_general(q, k, (((1,), (1,)), ((), ())),
                             preferred_element_type=jnp.float32) * inv_scale
    if mask is not None:
        energy = jnp.where(mask == 0, jnp.float32(-1e10), energy)
    # numerically stable softmax over the key axis
    m = jnp.max(energy, axis=-1, keepdims=True)
    p = jnp.exp(energy - m)
    attn = p / jnp.sum(p, axis=-1, keepdims=True)
    attn_ref[...] = attn.astype(attn_ref.dtype)
    # TODO(synk): training-mode dropout would be applied to `attn` here.
    v = v_ref[...]                              # (Sk, Dh)
    ctx = jnp.dot(attn.astype(v.dtype), v, preferred_element_type=jnp.float32)
    ctx_ref[...] = ctx.astype(ctx_ref.dtype)


def _mha_core_kernel(q_ref, k_ref, v_ref, attn_ref, ctx_ref, *, inv_scale):
    _attention_body(q_ref, k_ref, v_ref, attn_ref, ctx_ref, inv_scale)


def _mha_core_kernel_masked(mask_ref, q_ref, k_ref, v_ref, attn_ref, ctx_ref, *,
                            inv_scale):
    _attention_body(q_ref, k_ref, v_ref, attn_ref, ctx_ref, inv_scale,
                    mask=mask_ref[...])


# ----------------------------------------------------------------------------
# Full module forward.
# ----------------------------------------------------------------------------
@functools.partial(jax.jit, static_argnames=("n_heads", "tm", "tq"))
def multi_head_attention(query, key, value, wq, bq, wk, bk, wv, bv, wo, bo,
                         mask=None, *, n_heads, tm=256, tq=256):
    """query/key/value: [B, S, hid].  Weights stored [in, out] (transposed vs torch)."""
    B, Sq, hid = query.shape
    Sk = key.shape[1]
    assert hid % n_heads == 0
    Dh = hid // n_heads
    inv_scale = 1.0 / math.sqrt(Dh)

    # --- Q/K/V projections (row-tiled matmul kernels) ---
    q2 = _linear(query.reshape(B * Sq, hid), wq, bq, tm=tm)
    k2 = _linear(key.reshape(B * Sk, hid), wk, bk, tm=tm)
    v2 = _linear(value.reshape(B * Sk, hid), wv, bv, tm=tm)
    Q4 = q2.reshape(B, Sq, n_heads, Dh).transpose(0, 2, 1, 3)   # [B, H, Sq, Dh]
    K4 = k2.reshape(B, Sk, n_heads, Dh).transpose(0, 2, 1, 3)   # [B, H, Sk, Dh]
    V4 = v2.reshape(B, Sk, n_heads, Dh).transpose(0, 2, 1, 3)   # [B, H, Sk, Dh]

    # --- fused attention core ---
    tq_ = min(tq, Sq)
    if Sq % tq_ != 0:
        tq_ = math.gcd(Sq, tq_)
    assert Sq % tq_ == 0 and (tq_ % 8 == 0 or tq_ == Sq), (Sq, tq_)

    grid = (B, n_heads, Sq // tq_)
    q_spec = pl.BlockSpec((None, None, tq_, Dh), lambda b, h, qi: (b, h, qi, 0))
    kv_spec = pl.BlockSpec((None, None, Sk, Dh), lambda b, h, qi: (b, h, 0, 0))
    attn_spec = pl.BlockSpec((None, None, tq_, Sk), lambda b, h, qi: (b, h, qi, 0))
    ctx_spec = pl.BlockSpec((None, None, tq_, Dh), lambda b, h, qi: (b, h, qi, 0))

    itemsize = jnp.dtype(query.dtype).itemsize
    cost = pl.CostEstimate(
        flops=2 * 2 * B * n_heads * Sq * Sk * Dh,
        transcendentals=B * n_heads * Sq * Sk,
        bytes_accessed=itemsize * B * n_heads * (2 * Sq * Dh + 2 * Sk * Dh + Sq * Sk),
    )
    out_shape = (
        jax.ShapeDtypeStruct((B, n_heads, Sq, Sk), query.dtype),   # attention
        jax.ShapeDtypeStruct((B, n_heads, Sq, Dh), query.dtype),   # context
    )

    if mask is None:
        kernel = functools.partial(_mha_core_kernel, inv_scale=inv_scale)
        in_specs = [q_spec, kv_spec, kv_spec]
        operands = (Q4, K4, V4)
    else:
        mask_b = jnp.broadcast_to(mask, (B, n_heads, Sq, Sk)).astype(jnp.int32)
        kernel = functools.partial(_mha_core_kernel_masked, inv_scale=inv_scale)
        mask_spec = pl.BlockSpec((None, None, tq_, Sk),
                                 lambda b, h, qi: (b, h, qi, 0))
        in_specs = [mask_spec, q_spec, kv_spec, kv_spec]
        operands = (mask_b, Q4, K4, V4)

    attn, ctx = pl.pallas_call(
        kernel,
        out_shape=out_shape,
        grid_spec=pltpu.PrefetchScalarGridSpec(
            num_scalar_prefetch=0,
            grid=grid,
            in_specs=in_specs,
            out_specs=[attn_spec, ctx_spec],
        ),
        compiler_params=pltpu.CompilerParams(
            dimension_semantics=("parallel", "parallel", "parallel")),
        cost_estimate=cost,
    )(*operands)

    # --- merge heads + output projection ---
    x = ctx.transpose(0, 2, 1, 3).reshape(B * Sq, hid)
    out = _linear(x, wo, bo, tm=tm).reshape(B, Sq, hid)
    return out, attn


if __name__ == "__main__":
    # Small, module-consistent shapes: batch=2, seq=8, hid_dim=32, n_heads=4.
    B, S, HID, HEADS = 2, 8, 32, 4

    key = jax.random.PRNGKey(0)
    ks = jax.random.split(key, 11)
    q_in = jax.random.normal(ks[0], (B, S, HID), dtype=jnp.float32)
    k_in = jax.random.normal(ks[1], (B, S, HID), dtype=jnp.float32)
    v_in = jax.random.normal(ks[2], (B, S, HID), dtype=jnp.float32)

    def init_linear(kw, kb, d_in, d_out):
        w = jax.random.normal(kw, (d_in, d_out), dtype=jnp.float32) * 0.05
        b = jax.random.normal(kb, (d_out,), dtype=jnp.float32) * 0.05
        return w, b

    wq, bq = init_linear(ks[3], ks[4], HID, HID)
    wk, bk = init_linear(ks[5], ks[6], HID, HID)
    wv, bv = init_linear(ks[7], ks[8], HID, HID)
    wo, bo = init_linear(ks[9], ks[10], HID, HID)

    # key-padding mask [B, 1, 1, Sk] (mask out the last 2 keys of batch 1)
    mask = jnp.ones((B, 1, 1, S), dtype=jnp.int32)
    mask = mask.at[1, :, :, -2:].set(0)

    def ref_mha(query, key_, value, mask_=None):
        Dh = HID // HEADS
        Q = (query @ wq + bq).reshape(B, -1, HEADS, Dh).transpose(0, 2, 1, 3)
        K = (key_ @ wk + bk).reshape(B, -1, HEADS, Dh).transpose(0, 2, 1, 3)
        V = (value @ wv + bv).reshape(B, -1, HEADS, Dh).transpose(0, 2, 1, 3)
        energy = jnp.einsum("bhqd,bhkd->bhqk", Q, K) / jnp.sqrt(jnp.float32(Dh))
        if mask_ is not None:
            energy = jnp.where(mask_ == 0, -1e10, energy)
        attn_ = jax.nn.softmax(energy, axis=-1)
        x = jnp.einsum("bhqk,bhkd->bhqd", attn_, V)
        x = x.transpose(0, 2, 1, 3).reshape(B, -1, HID)
        return x @ wo + bo, attn_

    # no-mask path
    out, attn = multi_head_attention(q_in, k_in, v_in, wq, bq, wk, bk, wv, bv,
                                     wo, bo, None, n_heads=HEADS)
    out = jax.block_until_ready(out)
    ref_out, ref_attn = ref_mha(q_in, k_in, v_in, None)
    assert jnp.allclose(out, ref_out, atol=5e-3, rtol=5e-3), "output mismatch (no mask)"
    assert jnp.allclose(attn, ref_attn, atol=5e-3, rtol=5e-3), "attention mismatch (no mask)"

    # masked path
    out_m, attn_m = multi_head_attention(q_in, k_in, v_in, wq, bq, wk, bk, wv, bv,
                                         wo, bo, mask, n_heads=HEADS)
    out_m = jax.block_until_ready(out_m)
    ref_out_m, ref_attn_m = ref_mha(q_in, k_in, v_in, mask)
    assert jnp.allclose(out_m, ref_out_m, atol=5e-3, rtol=5e-3), "output mismatch (masked)"
    assert jnp.allclose(attn_m, ref_attn_m, atol=5e-3, rtol=5e-3), "attention mismatch (masked)"

    print("KERNEL_OK")
</pallas_src>

<mosaic_0001>
module attributes {stable_mosaic.version = 11 : i64} {
  func.func @_linear_kernel(%arg0: i32, %arg1: memref<16x32xf32, #tpu.memory_space<vmem>>, %arg2: memref<32x32xf32, #tpu.memory_space<vmem>>, %arg3: memref<1x32xf32, #tpu.memory_space<vmem>>, %arg4: memref<16x32xf32, #tpu.memory_space<vmem>>) attributes {dimension_semantics = [#tpu.dimension_semantics<parallel>], iteration_bounds = array<i64: 1>, scalar_prefetch = 0 : i64, scratch_operands = 0 : i64, tpu.core_type = #tpu.core_type<tc>, window_params = [{transform_indices = @transform_0, window_bounds = array<i64: 16, 32>}, {pipeline_mode = #tpu.pipeline_mode<synchronous>, transform_indices = @transform_1, window_bounds = array<i64: 32, 32>}, {pipeline_mode = #tpu.pipeline_mode<synchronous>, transform_indices = @transform_2, window_bounds = array<i64: 1, 32>}, {transform_indices = @transform_3, window_bounds = array<i64: 16, 32>}]} {
    %c0 = arith.constant 0 : index
    %c0_0 = arith.constant 0 : index
    %0 = vector.load %arg1[%c0, %c0_0] : memref<16x32xf32, #tpu.memory_space<vmem>>, vector<16x32xf32>
    %c0_1 = arith.constant 0 : index
    %c0_2 = arith.constant 0 : index
    %1 = vector.load %arg2[%c0_1, %c0_2] : memref<32x32xf32, #tpu.memory_space<vmem>>, vector<32x32xf32>
    %cst = arith.constant dense<0.000000e+00> : vector<16x32xf32>
    %2 = tpu.matmul %0, %1, %cst {dimension_numbers = #tpu.dot_dimension_numbers<[1], [0], [0], [1], [0, 0, 1, 1], [], []>} : vector<16x32xf32>, vector<32x32xf32>, vector<16x32xf32> -> vector<16x32xf32>
    %c0_3 = arith.constant 0 : index
    %c0_4 = arith.constant 0 : index
    %3 = vector.load %arg3[%c0_3, %c0_4] : memref<1x32xf32, #tpu.memory_space<vmem>>, vector<1x32xf32>
    %4 = vector.broadcast %3 : vector<1x32xf32> to vector<16x32xf32>
    %5 = arith.addf %2, %4 : vector<16x32xf32>
    %c0_5 = arith.constant 0 : index
    %c0_6 = arith.constant 0 : index
    %6 = vector.load %arg4[%c0_5, %c0_6] : memref<16x32xf32, #tpu.memory_space<vmem>>, vector<16x32xf32>
    tpu.vector_store %arg4[%c0_5, %c0_6], %5 {strides = array<i32>} : memref<16x32xf32, #tpu.memory_space<vmem>>, vector<16x32xf32>,
    return
  }
  func.func @transform_0(%arg0: i32) -> (i32, i32) {
    %c0_i32 = arith.constant 0 : i32
    %c0_i32_0 = arith.constant 0 : i32
    return %arg0, %c0_i32 : i32, i32
  }
  func.func @transform_1(%arg0: i32) -> (i32, i32) {
    %c0_i32 = arith.constant 0 : i32
    %c0_i32_0 = arith.constant 0 : i32
    %c0_i32_1 = arith.constant 0 : i32
    return %c0_i32, %c0_i32_0 : i32, i32
  }
  func.func @transform_2(%arg0: i32) -> (i32, i32) {
    %c0_i32 = arith.constant 0 : i32
    %c0_i32_0 = arith.constant 0 : i32
    %c0_i32_1 = arith.constant 0 : i32
    return %c0_i32, %c0_i32_0 : i32, i32
  }
  func.func @transform_3(%arg0: i32) -> (i32, i32) {
    %c0_i32 = arith.constant 0 : i32
    %c0_i32_0 = arith.constant 0 : i32
    return %arg0, %c0_i32 : i32, i32
  }
}

module attributes {stable_mosaic.version = 11 : i64} {
  func.func @_linear_kernel(%arg0: i32, %arg1: memref<16x32xf32, #tpu.memory_space<vmem>>, %arg2: memref<32x32xf32, #tpu.memory_space<vmem>>, %arg3: memref<1x32xf32, #tpu.memory_space<vmem>>, %arg4: memref<16x32xf32, #tpu.memory_space<vmem>>) attributes {dimension_semantics = [#tpu.dimension_semantics<parallel>], iteration_bounds = array<i64: 1>, scalar_prefetch = 0 : i64, scratch_operands = 0 : i64, tpu.core_type = #tpu.core_type<tc>, window_params = [{transform_indices = @transform_0, window_bounds = array<i64: 16, 32>}, {pipeline_mode = #tpu.pipeline_mode<synchronous>, transform_indices = @transform_1, window_bounds = array<i64: 32, 32>}, {pipeline_mode = #tpu.pipeline_mode<synchronous>, transform_indices = @transform_2, window_bounds = array<i64: 1, 32>}, {transform_indices = @transform_3, window_bounds = array<i64: 16, 32>}]} {
    %c0 = arith.constant 0 : index
    %c0_0 = arith.constant 0 : index
    %0 = vector.load %arg1[%c0, %c0_0] : memref<16x32xf32, #tpu.memory_space<vmem>>, vector<16x32xf32>
    %c0_1 = arith.constant 0 : index
    %c0_2 = arith.constant 0 : index
    %1 = vector.load %arg2[%c0_1, %c0_2] : memref<32x32xf32, #tpu.memory_space<vmem>>, vector<32x32xf32>
    %cst = arith.constant dense<0.000000e+00> : vector<16x32xf32>
    %2 = tpu.matmul %0, %1, %cst {dimension_numbers = #tpu.dot_dimension_numbers<[1], [0], [0], [1], [0, 0, 1, 1], [], []>} : vector<16x32xf32>, vector<32x32xf32>, vector<16x32xf32> -> vector<16x32xf32>
    %c0_3 = arith.constant 0 : index
    %c0_4 = arith.constant 0 : index
    %3 = vector.load %arg3[%c0_3, %c0_4] : memref<1x32xf32, #tpu.memory_space<vmem>>, vector<1x32xf32>
    %4 = vector.broadcast %3 : vector<1x32xf32> to vector<16x32xf32>
    %5 = arith.addf %2, %4 : vector<16x32xf32>
    %c0_5 = arith.constant 0 : index
    %c0_6 = arith.constant 0 : index
    %6 = vector.load %arg4[%c0_5, %c0_6] : memref<16x32xf32, #tpu.memory_space<vmem>>, vector<16x32xf32>
    tpu.vector_store %arg4[%c0_5, %c0_6], %5 {strides = array<i32>} : memref<16x32xf32, #tpu.memory_space<vmem>>, vector<16x32xf32>,
    return
  }
  func.func @transform_0(%arg0: i32) -> (i32, i32) {
    %c0_i32 = arith.constant 0 : i32
    %c0_i32_0 = arith.constant 0 : i32
    return %arg0, %c0_i32 : i32, i32
  }
  func.func @transform_1(%arg0: i32) -> (i32, i32) {
    %c0_i32 = arith.constant 0 : i32
    %c0_i32_0 = arith.constant 0 : i32
    %c0_i32_1 = arith.constant 0 : i32
    return %c0_i32, %c0_i32_0 : i32, i32
  }
  func.func @transform_2(%arg0: i32) -> (i32, i32) {
    %c0_i32 = arith.constant 0 : i32
    %c0_i32_0 = arith.constant 0 : i32
    %c0_i32_1 = arith.constant 0 : i32
    return %c0_i32, %c0_i32_0 : i32, i32
  }
  func.func @transform_3(%arg0: i32) -> (i32, i32) {
    %c0_i32 = arith.constant 0 : i32
    %c0_i32_0 = arith.constant 0 : i32
    return %arg0, %c0_i32 : i32, i32
  }
}

module attributes {stable_mosaic.version = 11 : i64} {
  func.func @_mha_core_kernel(%arg0: i32, %arg1: i32, %arg2: i32, %arg3: memref<1x1x8x8xf32, #tpu.memory_space<vmem>>, %arg4: memref<1x1x8x8xf32, #tpu.memory_space<vmem>>, %arg5: memref<1x1x8x8xf32, #tpu.memory_space<vmem>>, %arg6: memref<1x1x8x8xf32, #tpu.memory_space<vmem>>, %arg7: memref<1x1x8x8xf32, #tpu.memory_space<vmem>>) attributes {dimension_semantics = [#tpu.dimension_semantics<parallel>, #tpu.dimension_semantics<parallel>, #tpu.dimension_semantics<parallel>], iteration_bounds = array<i64: 2, 4, 1>, scalar_prefetch = 0 : i64, scratch_operands = 0 : i64, tpu.core_type = #tpu.core_type<tc>, window_params = [{transform_indices = @transform_0, window_bounds = array<i64: 1, 1, 8, 8>}, {transform_indices = @transform_1, window_bounds = array<i64: 1, 1, 8, 8>}, {transform_indices = @transform_2, window_bounds = array<i64: 1, 1, 8, 8>}, {transform_indices = @transform_3, window_bounds = array<i64: 1, 1, 8, 8>}, {transform_indices = @transform_4, window_bounds = array<i64: 1, 1, 8, 8>}]} {
    %c0 = arith.constant 0 : index
    %c0_0 = arith.constant 0 : index
    %c0_1 = arith.constant 0 : index
    %c0_2 = arith.constant 0 : index
    %0 = vector.load %arg3[%c0, %c0_0, %c0_1, %c0_2] : memref<1x1x8x8xf32, #tpu.memory_space<vmem>>, vector<1x1x8x8xf32>
    %1 = vector.shape_cast %0 : vector<1x1x8x8xf32> to vector<8x8xf32>
    %c0_3 = arith.constant 0 : index
    %c0_4 = arith.constant 0 : index
    %c0_5 = arith.constant 0 : index
    %c0_6 = arith.constant 0 : index
    %2 = vector.load %arg4[%c0_3, %c0_4, %c0_5, %c0_6] : memref<1x1x8x8xf32, #tpu.memory_space<vmem>>, vector<1x1x8x8xf32>
    %3 = vector.shape_cast %2 : vector<1x1x8x8xf32> to vector<8x8xf32>
    %cst = arith.constant dense<0.000000e+00> : vector<8x8xf32>
    %4 = tpu.matmul %1, %3, %cst {dimension_numbers = #tpu.dot_dimension_numbers<[1], [1], [0], [0], [0, 0, 1, 0], [], []>} : vector<8x8xf32>, vector<8x8xf32>, vector<8x8xf32> -> vector<8x8xf32>
    %cst_7 = arith.constant 0.353553385 : f32
    %5 = vector.broadcast %cst_7 : f32 to vector<8x8xf32>
    %6 = arith.mulf %4, %5 : vector<8x8xf32>
    %cst_8 = arith.constant dense<0xFF800000> : vector<8xf32>
    %7 = vector.multi_reduction <maximumf>, %6, %cst_8 [1] : vector<8x8xf32> to vector<8xf32>
    %8 = vector.shape_cast %7 : vector<8xf32> to vector<8x1xf32>
    %9 = vector.broadcast %8 : vector<8x1xf32> to vector<8x8xf32>
    %10 = arith.subf %6, %9 : vector<8x8xf32>
    %11 = math.exp %10 : vector<8x8xf32>
    %cst_9 = arith.constant dense<0.000000e+00> : vector<8xf32>
    %12 = vector.multi_reduction <add>, %11, %cst_9 [1] : vector<8x8xf32> to vector<8xf32>
    %13 = vector.shape_cast %12 : vector<8xf32> to vector<8x1xf32>
    %14 = vector.broadcast %13 : vector<8x1xf32> to vector<8x8xf32>
    %15 = arith.divf %11, %14 : vector<8x8xf32>
    %c0_10 = arith.constant 0 : index
    %c0_11 = arith.constant 0 : index
    %c0_12 = arith.constant 0 : index
    %c0_13 = arith.constant 0 : index
    %16 = vector.load %arg6[%c0_10, %c0_11, %c0_12, %c0_13] : memref<1x1x8x8xf32, #tpu.memory_space<vmem>>, vector<1x1x8x8xf32>
    %17 = vector.shape_cast %16 : vector<1x1x8x8xf32> to vector<8x8xf32>
    %18 = vector.shape_cast %15 : vector<8x8xf32> to vector<1x1x8x8xf32>
    tpu.vector_store %arg6[%c0_10, %c0_11, %c0_12, %c0_13], %18 {strides = array<i32>} : memref<1x1x8x8xf32, #tpu.memory_space<vmem>>, vector<1x1x8x8xf32>,
    %c0_14 = arith.constant 0 : index
    %c0_15 = arith.constant 0 : index
    %c0_16 = arith.constant 0 : index
    %c0_17 = arith.constant 0 : index
    %19 = vector.load %arg5[%c0_14, %c0_15, %c0_16, %c0_17] : memref<1x1x8x8xf32, #tpu.memory_space<vmem>>, vector<1x1x8x8xf32>
    %20 = vector.shape_cast %19 : vector<1x1x8x8xf32> to vector<8x8xf32>
    %cst_18 = arith.constant dense<0.000000e+00> : vector<8x8xf32>
    %21 = tpu.matmul %15, %20, %cst_18 {dimension_numbers = #tpu.dot_dimension_numbers<[1], [0], [0], [1], [0, 0, 1, 1], [], []>} : vector<8x8xf32>, vector<8x8xf32>, vector<8x8xf32> -> vector<8x8xf32>
    %c0_19 = arith.constant 0 : index
    %c0_20 = arith.constant 0 : index
    %c0_21 = arith.constant 0 : index
    %c0_22 = arith.constant 0 : index
    %22 = vector.load %arg7[%c0_19, %c0_20, %c0_21, %c0_22] : memref<1x1x8x8xf32, #tpu.memory_space<vmem>>, vector<1x1x8x8xf32>
    %23 = vector.shape_cast %22 : vector<1x1x8x8xf32> to vector<8x8xf32>
    %24 = vector.shape_cast %21 : vector<8x8xf32> to vector<1x1x8x8xf32>
    tpu.vector_store %arg7[%c0_19, %c0_20, %c0_21, %c0_22], %24 {strides = array<i32>} : memref<1x1x8x8xf32, #tpu.memory_space<vmem>>, vector<1x1x8x8xf32>,
    return
  }
  func.func @transform_0(%arg0: i32, %arg1: i32, %arg2: i32) -> (i32, i32, i32, i32) {
    %c0_i32 = arith.constant 0 : i32
    %c0_i32_0 = arith.constant 0 : i32
    return %arg0, %arg1, %arg2, %c0_i32 : i32, i32, i32, i32
  }
  func.func @transform_1(%arg0: i32, %arg1: i32, %arg2: i32) -> (i32, i32, i32, i32) {
    %c0_i32 = arith.constant 0 : i32
    %c0_i32_0 = arith.constant 0 : i32
    %c0_i32_1 = arith.constant 0 : i32
    return %arg0, %arg1, %c0_i32, %c0_i32_0 : i32, i32, i32, i32
  }
  func.func @transform_2(%arg0: i32, %arg1: i32, %arg2: i32) -> (i32, i32, i32, i32) {
    %c0_i32 = arith.constant 0 : i32
    %c0_i32_0 = arith.constant 0 : i32
    %c0_i32_1 = arith.constant 0 : i32
    return %arg0, %arg1, %c0_i32, %c0_i32_0 : i32, i32, i32, i32
  }
  func.func @transform_3(%arg0: i32, %arg1: i32, %arg2: i32) -> (i32, i32, i32, i32) {
    %c0_i32 = arith.constant 0 : i32
    %c0_i32_0 = arith.constant 0 : i32
    return %arg0, %arg1, %arg2, %c0_i32 : i32, i32, i32, i32
  }
  func.func @transform_4(%arg0: i32, %arg1: i32, %arg2: i32) -> (i32, i32, i32, i32) {
    %c0_i32 = arith.constant 0 : i32
    %c0_i32_0 = arith.constant 0 : i32
    return %arg0, %arg1, %arg2, %c0_i32 : i32, i32, i32, i32
  }
}

module attributes {stable_mosaic.version = 11 : i64} {
  func.func @_linear_kernel(%arg0: i32, %arg1: memref<16x32xf32, #tpu.memory_space<vmem>>, %arg2: memref<32x32xf32, #tpu.memory_space<vmem>>, %arg3: memref<1x32xf32, #tpu.memory_space<vmem>>, %arg4: memref<16x32xf32, #tpu.memory_space<vmem>>) attributes {dimension_semantics = [#tpu.dimension_semantics<parallel>], iteration_bounds = array<i64: 1>, scalar_prefetch = 0 : i64, scratch_operands = 0 : i64, tpu.core_type = #tpu.core_type<tc>, window_params = [{transform_indices = @transform_0, window_bounds = array<i64: 16, 32>}, {pipeline_mode = #tpu.pipeline_mode<synchronous>, transform_indices = @transform_1, window_bounds = array<i64: 32, 32>}, {pipeline_mode = #tpu.pipeline_mode<synchronous>, transform_indices = @transform_2, window_bounds = array<i64: 1, 32>}, {transform_indices = @transform_3, window_bounds = array<i64: 16, 32>}]} {
    %c0 = arith.constant 0 : index
    %c0_0 = arith.constant 0 : index
    %0 = vector.load %arg1[%c0, %c0_0] : memref<16x32xf32, #tpu.memory_space<vmem>>, vector<16x32xf32>
    %c0_1 = arith.constant 0 : index
    %c0_2 = arith.constant 0 : index
    %1 = vector.load %arg2[%c0_1, %c0_2] : memref<32x32xf32, #tpu.memory_space<vmem>>, vector<32x32xf32>
    %cst = arith.constant dense<0.000000e+00> : vector<16x32xf32>
    %2 = tpu.matmul %0, %1, %cst {dimension_numbers = #tpu.dot_dimension_numbers<[1], [0], [0], [1], [0, 0, 1, 1], [], []>} : vector<16x32xf32>, vector<32x32xf32>, vector<16x32xf32> -> vector<16x32xf32>
    %c0_3 = arith.constant 0 : index
    %c0_4 = arith.constant 0 : index
    %3 = vector.load %arg3[%c0_3, %c0_4] : memref<1x32xf32, #tpu.memory_space<vmem>>, vector<1x32xf32>
    %4 = vector.broadcast %3 : vector<1x32xf32> to vector<16x32xf32>
    %5 = arith.addf %2, %4 : vector<16x32xf32>
    %c0_5 = arith.constant 0 : index
    %c0_6 = arith.constant 0 : index
    %6 = vector.load %arg4[%c0_5, %c0_6] : memref<16x32xf32, #tpu.memory_space<vmem>>, vector<16x32xf32>
    tpu.vector_store %arg4[%c0_5, %c0_6], %5 {strides = array<i32>} : memref<16x32xf32, #tpu.memory_space<vmem>>, vector<16x32xf32>,
    return
  }
  func.func @transform_0(%arg0: i32) -> (i32, i32) {
    %c0_i32 = arith.constant 0 : i32
    %c0_i32_0 = arith.constant 0 : i32
    return %arg0, %c0_i32 : i32, i32
  }
  func.func @transform_1(%arg0: i32) -> (i32, i32) {
    %c0_i32 = arith.constant 0 : i32
    %c0_i32_0 = arith.constant 0 : i32
    %c0_i32_1 = arith.constant 0 : i32
    return %c0_i32, %c0_i32_0 : i32, i32
  }
  func.func @transform_2(%arg0: i32) -> (i32, i32) {
    %c0_i32 = arith.constant 0 : i32
    %c0_i32_0 = arith.constant 0 : i32
    %c0_i32_1 = arith.constant 0 : i32
    return %c0_i32, %c0_i32_0 : i32, i32
  }
  func.func @transform_3(%arg0: i32) -> (i32, i32) {
    %c0_i32 = arith.constant 0 : i32
    %c0_i32_0 = arith.constant 0 : i32
    return %arg0, %c0_i32 : i32, i32
  }
}

</mosaic_0001>

<bundles_post_ra>
// kernel: multi_head_attention.5
= control target key start
LH: loop header
LB: loop body
LE: loop exit
PB: predicated region body
PF: predicated region fallthrough
CT: control target
= control target key end

     0   :  { %8 = vsyncpa [#allocation3], 0  ;;  %s256_s0 = inlined_call_operand.hbm [shape: f32[16,32], index: 0, kind: input, shape index: {}]   ;;  %s257_s1 = inlined_call_operand.hbm [shape: f32[32,32], index: 1, kind: input, shape index: {}]   ;;  %s258_s2 = inlined_call_operand.vmem [shape: f32[1,32], index: 2, kind: input, shape index: {}]   ;;  %s259_s3 = inlined_call_operand.vmem [shape: f32[16,32], index: 3, kind: output, shape index: {}]  }
   0x1   :  { %9 = vsyncpa [#allocation5], 0  ;;  %s213_s12 = smov [#allocation2]  }
   0x2   :  { %s15_s13 = sshll.u32 %s213_s12, 4  ;;  %s16_s13 = int_to_ptr.vmem [resolvable:$true] %s15_s13 }
   0x3   :  { %s177_s14 = scalar_lea.vmem %s16_s13, 256  ;;  %p182_p1 = scmp.lt.s32.totalorder %s16_s13, %s16_s13 }
   0x4   :  { %p178_p0 = scmp.ne.s32.totalorder %s16_s13, %s177_s14  ;;  %p183_p2 = scmp.lt.s32.totalorder %s177_s14, %s177_s14 }
   0x6   :  { %p184_p3 = por %p183_p2, %p182_p1 }
   0x8   :  { %p185_p4 = pnand %p184_p3, %p178_p0 }
   0xa   :  { %188 = shalt.err (!%p185_p4)
}
   0xb   :  { %s214_s15 = smov 128   ;;  %s215_s16 = smov 8  }
   0xc   :  { %21 = dma.hbm_to_vmem [thread:$0]  %s256_s0, 256, %s16_s13, [#allocation3], %s214_s15, %s214_s15, %s215_s16  }
   0xd   :  { %s216_s19 = smov [#allocation4]  }
   0xe   :  { %s27_s20 = sshll.u32 %s216_s19, 4  ;;  %s28_s20 = int_to_ptr.vmem [resolvable:$true] %s27_s20 }
   0xf   :  { %s197_s21 = scalar_lea.vmem %s28_s20, 512  ;;  %p202_p6 = scmp.lt.s32.totalorder %s28_s20, %s28_s20 }
  0x10   :  { %p198_p5 = scmp.ne.s32.totalorder %s28_s20, %s197_s21  ;;  %p203_p7 = scmp.lt.s32.totalorder %s197_s21, %s197_s21 }
  0x12   :  { %p204_p8 = por %p203_p7, %p202_p6 }
  0x14   :  { %p205_p9 = pnand %p204_p8, %p198_p5 }
  0x16   :  { %208 = shalt.err (!%p205_p9)
}
  0x17   :  { %33 = dma.hbm_to_vmem [thread:$0]  %s257_s1, 512, %s28_s20, [#allocation5], %s214_s15, %s214_s15, %s215_s16  }
  0x18   :  { %209 = dma.done.wait [#allocation3], 256  }
  0x19   :  { %210 = vsyncadd [#allocation3], 4294967040 }
  0x1a   :  { %211 = dma.done.wait [#allocation5], 512  }
  0x1b   :  { %212 = vsyncadd [#allocation5], 4294966784  ;;  %vm55_vm0 = vcmask 261120   ;;  %v47_v0 = vld [vmem:[#allocation4 + $0x18] sm:$0xff]  ;;  %v46_v1 = vld [vmem:[#allocation4 + $0x10] sm:$0xff] }
  0x1c   :  { %154 = vmatprep.subr.mxu0 %v47_v0  ;;  %v42_v2 = vld [vmem:[#allocation2] sm:$0xff]  ;;  %v45_v3 = vld [vmem:[#allocation4 + $0x8] sm:$0xff]  ;;  %v44_v4 = vld [vmem:[#allocation4] sm:$0xff] }
  0x1d   :  { %155 = vmatpush3.msra.mxu0 %v47_v0  ;;  %162 = vmatprep.mubr.msk.f32.mxu0 %vm55_vm0, %v42_v2  ;;  %v43_v5 = vld [vmem:[#allocation2 + $0x8] sm:$0xff]  ;;  %v145_v6 = vld [vmem:[%s258_s2] ss:$0 sm:$0xff] }
  0x1e   :  { %156 = vmatprep.subr.mxu0 %v46_v1 }
  0x1f   :  { %157 = vmatpush3.msra.mxu0 %v46_v1 }
  0x20   :  { %158 = vmatprep.subr.mxu0 %v45_v3 }
  0x21   :  { %159 = vmatpush3.msra.mxu0 %v45_v3 }
  0x22   :  { %160 = vmatprep.subr.mxu0 %v44_v4 }
  0x23   :  { %161 = vmatpush3.msra.mxu0 %v44_v4 }
  0x24   :  { %163 = vmatmul.mubr.msk.f32.vlgmr.msra.gmra.mxu0 %vm55_vm0, %v43_v5 }
  0xe4   :  { %v164_v7 = vpop.f32.mrf.mxu0 }
  0xe5   :  { %v134_v8 = vadd.f32 %v164_v7, %v145_v6 }
  0xe6   :  { %v128_v9 = vpop.f32.mrf.mxu0 }
  0xe7   :  { %138 = vst.msk [vmem:[%s259_s3 + $0x8] sm:$0xff] %vm55_vm0, %v134_v8  ;;  %v129_v10 = vadd.f32 %v145_v6, %v128_v9 }
  0xe9   :  { %137 = vst.msk [vmem:[%s259_s3] sm:$0xff] %vm55_vm0, %v129_v10 }
  0xea   :  { %143 = vsyncpa [#allocation3], 1 }
  0xeb   :  { %144 = vsyncpa [#allocation5], 1 }

// kernel: multi_head_attention.6
= control target key start
LH: loop header
LB: loop body
LE: loop exit
PB: predicated region body
PF: predicated region fallthrough
CT: control target
= control target key end

     0   :  { %vm27_vm0 = vcmask 261120   ;;  %s186_s1 = inlined_call_operand.vmem [shape: f32[32,32], index: 1, kind: input, shape index: {}]   ;;  %s187_s0 = inlined_call_operand.vmem [shape: f32[16,32], index: 0, kind: input, shape index: {}]   ;;  %s188_s2 = inlined_call_operand.vmem [shape: f32[1,32], index: 2, kind: input, shape index: {}]   ;;  %s189_s3 = inlined_call_operand.vmem [shape: f32[16,32], index: 3, kind: output, shape index: {}]  }
   0x1   :  { %v19_v0 = vld [vmem:[%s186_s1 + $0x18] sm:$0xff]  ;;  %v18_v1 = vld [vmem:[%s186_s1 + $0x10] sm:$0xff]  ;;  %v14_v2 = vld [vmem:[%s187_s0] sm:$0xff] }
   0x2   :  { %124 = vmatprep.subr.mxu0 %v19_v0  ;;  %v17_v3 = vld [vmem:[%s186_s1 + $0x8] sm:$0xff]  ;;  %132 = vmatprep.mubr.msk.f32.mxu0 %vm27_vm0, %v14_v2  ;;  %v16_v4 = vld [vmem:[%s186_s1] sm:$0xff] }
   0x3   :  { %125 = vmatpush3.msra.mxu0 %v19_v0  ;;  %v15_v5 = vld [vmem:[%s187_s0 + $0x8] sm:$0xff]  ;;  %v115_v6 = vld [vmem:[%s188_s2] ss:$0 sm:$0xff] }
   0x4   :  { %126 = vmatprep.subr.mxu0 %v18_v1 }
   0x5   :  { %127 = vmatpush3.msra.mxu0 %v18_v1 }
   0x6   :  { %128 = vmatprep.subr.mxu0 %v17_v3 }
   0x7   :  { %129 = vmatpush3.msra.mxu0 %v17_v3 }
   0x8   :  { %130 = vmatprep.subr.mxu0 %v16_v4 }
   0x9   :  { %131 = vmatpush3.msra.mxu0 %v16_v4 }
   0xa   :  { %133 = vmatmul.mubr.msk.f32.vlgmr.msra.gmra.mxu0 %vm27_vm0, %v15_v5 }
  0xca   :  { %v134_v7 = vpop.f32.mrf.mxu0 }
  0xcb   :  { %v106_v8 = vadd.f32 %v134_v7, %v115_v6 }
  0xcc   :  { %v100_v9 = vpop.f32.mrf.mxu0 }
  0xcd   :  { %110 = vst.msk [vmem:[%s189_s3 + $0x8] sm:$0xff] %vm27_vm0, %v106_v8  ;;  %v101_v10 = vadd.f32 %v115_v6, %v100_v9 }
  0xcf   :  { %109 = vst.msk [vmem:[%s189_s3] sm:$0xff] %vm27_vm0, %v101_v10 }

// kernel: multi_head_attention.8
= control target key start
LH: loop header
LB: loop body
LE: loop exit
PB: predicated region body
PF: predicated region fallthrough
CT: control target
= control target key end

     0   :  { %s1075_s0 = inlined_call_operand.vmem [shape: f32[2,4,8,8], index: 0, kind: input, shape index: {}]   ;;  %s1076_s1 = inlined_call_operand.vmem [shape: f32[2,4,8,8], index: 1, kind: input, shape index: {}]   ;;  %s1077_s2 = inlined_call_operand.vmem [shape: f32[2,4,8,8], index: 2, kind: input, shape index: {}]   ;;  %s1078_s3 = inlined_call_operand.hbm [shape: f32[2,4,8,8], index: 3, kind: output, shape index: {0}]   ;;  %s1079_s4 = inlined_call_operand.vmem [shape: f32[2,4,8,8], index: 4, kind: output, shape index: {1}]  }
   0x1   :  { %1080 = sst [smem:[#allocation5_spill]] %s1075_s0 }
   0x2   :  { %1081 = sst [smem:[#allocation6_spill]] %s1076_s1 }
   0x3   :  { %10 = vsyncpa [#allocation3], 0 }
   0x4   :  { %12 = vsyncpa [#allocation3 + $0x1], 0  ;;  %s929_s15 = smov 0   ;;  %s931_s16 = smov 0  }
   0x5   :  { %s933_s17 = smov 0   ;;  %s935_s18 = smov 0  }
   0x6   :  { %s937_s19 = smov 0   ;;  %s939_s20 = smov 0  }
   0x7   :  { %s941_s21 = smov 0   ;;  %s943_s22 = smov 0  }
   0x8 LB: > { %s694_s23 = sadd.s32 4294967295, %s899_s22   ;;  %s695_s24 = sadd.s32 4294967294, %s899_s22   ;;  %s899_s22 = sphi %s943_s22, %s18_s22   ;;  %s895_s21 = sphi %s941_s21, %s1092_s21   ;;  %s891_s20 = sphi %s939_s20, %s1091_s20   ;;  %s887_s19 = sphi %s937_s19, %s1090_s19   ;;  %s883_s18 = sphi %s935_s18, %s1089_s18   ;;  %s879_s17 = sphi %s933_s17, %s1088_s17   ;;  %s875_s16 = sphi %s931_s16, %s1087_s16   ;;  %s871_s15 = sphi %s929_s15, %s1086_s15  }
   0x9   : > { %s33_s25 = sadd.s32 1, %s891_s20  ;;  %s37_s26 = sadd.s32 1, %s895_s21 }
   0xa   : > { %p35_p0 = scmp.ge.s32.totalorder %s33_s25, 4  ;;  %p144_p1 = scmp.ne.s32.totalorder %s879_s17, %s875_s16 }
   0xb   : > { %p145_p2 = scmp.eq.s32.totalorder %s694_s23, 7  ;;  %p150_p5 = scmp.ne.s32.totalorder %s875_s16, %s871_s15 }
   0xc   : > { %s1094_s25 = smov (%p35_p0, %s33_s25), 0  ;;  %s1096_s26 = smov (!%p35_p0, %s37_s26), %s895_s21 }
   0xd   : > { %s128_s27 = ssub.s32 %s891_s20, %s1094_s25  ;;  %p980_p3 = por %p145_p2, %p144_p1 }
   0xe   : > { %p39_p4 = scmp.ge.s32.totalorder %s1096_s26, 2  ;;  %p151_p6 = scmp.eq.s32.totalorder %s695_s24, 7 }
   0xf   : > { %p698_p7 = scmp.ge.s32.totalorder %s899_s22, 1  ;;  %p235_p9 = scmp.lt.s32.totalorder %s899_s22, 9 }
  0x10   : > { %s1098_s26 = smov (%p39_p4, %s1096_s26), 0  ;;  %p989_p8 = por %p151_p6, %p150_p5 }
  0x11   : > { %s127_s30 = ssub.s32 %s895_s21, %s1098_s26  ;;  %s134_s5 = sadd.s32 1, %s879_s17 }
  0x12   : > { %s129_s6 = sor.u32 %s128_s27, %s127_s30  ;;  %p236_p10 = pnand %p698_p7, %p235_p9 }
  0x13   : > { %p132_p11 = scmp.eq.s32.totalorder %s129_s6, 0  ;;  %p294_p12 = scmp.lt.s32.totalorder (!%p236_p10), %s887_s19, 1 }
  0x14   : > { %239 = sbr.rel (%p236_p10) target bundleno = 737 (0x2e1), region = 32  ;;  %p296_p13 = scmp.lt.s32.totalorder (!%p236_p10), %s883_s18, 3 }
  0x15   : > { %s998_s7 = scalar_select %p132_p11, %s879_s17, %s134_s5  }
  0x16   : > { %s1084_s1 = sld [smem:[#allocation6_spill]] (!%p236_p10)  ;;  %s712_s13 = sshll.u32 (!%p236_p10), %s887_s19, 2 }
  0x17   : > { %s1085_s0 = sld [smem:[#allocation5_spill]] (!%p236_p10)  ;;  %s523_s14 = sadd.s32 (!%p236_p10), %s883_s18, %s712_s13 }
  0x19   : > { %v901_v0 = vmov 0.0   ;;  %vm902_vm0 = vmmov 0   ;;  %s295_s8 = scalar_select %p294_p12, %s887_s19, 1  ;;  %vm334_vm1 = vcmask 64512  }
  0x1a   : > { %720 = vmatprep.subr.mxu0 %v901_v0  ;;  %722 = vmatprep.mubr.msk.f32.mxu0 %vm902_vm0, %v901_v0  ;;  %s297_s9 = scalar_select %p296_p13, %s883_s18, 3 }
  0x1b   : > { %725 = vmatprep.subr.mxu1 %v901_v0  ;;  %727 = vmatprep.mubr.msk.f32.mxu1 %vm902_vm0, %v901_v0  ;;  %s700_s10 = sshll.u32 %s295_s8, 2 }
  0x1c   : > { %s302_s11 = sadd.s32 %s700_s10, %s297_s9  ;;  %s278_s9 = sand.u32 1, %s875_s16  }
  0x1d   : > { %s1004_s12 = sshll.u32 %s302_s11, 3  ;;  %s699_s10 = sshll.u32 %s278_s9, 3 }
  0x1e   : > { %s312_s23 = scalar_lea.vmem %s1084_s1, %s1004_s12  ;;  %s304_s30 = scalar_lea.vmem %s1085_s0, %s1004_s12 }
  0x1f   : > { %v333_v1 = vld [vmem:[%s312_s23] sm:$0xff]  ;;  %s320_s8 = scalar_lea.vmem %s1077_s2, %s1004_s12  ;;  %s280_s11 = scalar_lea.vmem [#allocation2], %s699_s10 }
  0x20   : > { %721 = vmatpush3.xpose.msk.msra.mxu0 %vm334_vm1, %v333_v1  ;;  %v332_v2 = vld [vmem:[%s304_s30] sm:$0xff]  ;;  %s713_s23 = sshll.u32 %s523_s14, 7  ;;  %s527_s24 = sshll.u32 %s280_s11, 4  ;;  %s528_s24 = int_to_ptr.vmem [resolvable:$true] %s527_s24 }
  0x21   : > { %v424_v12 = vld [vmem:[%s320_s8] sm:$0xff]  ;;  %s525_s5 = scalar_lea.hbm %s1078_s3, %s713_s23  ;;  %s500_s6 = scalar_lea.sflag [#allocation3], %s278_s9 }
  0x22   : > { %726 = vmatpush3.msra.mxu1 %v424_v12  ;;  %s807_s8 = scalar_lea.vmem %s528_s24, 128  ;;  %s903_s0 = smov [#allocation2]  }
  0x23   : > { %723 = vmatmul.mubr.msk.f32.vlgmr.msra.gmra.mxu0 %vm334_vm1, %v332_v2  ;;  %p808_p0 = scmp.ne.s32.totalorder %s528_s24, %s807_s8  ;;  %s811_s1 = sshll.u32 %s903_s0, 4  ;;  %s812_s1 = int_to_ptr.vmem [resolvable:$false] %s811_s1 }
  0x24   : > { %s813_s10 = scalar_lea.vmem %s812_s1, 256  ;;  %p814_p4 = scmp.lt.s32.totalorder %s528_s24, %s812_s1 }
  0x25   : > { %p809_p1 = pnand %p808_p0, %p980_p3  ;;  %p815_p5 = scmp.lt.s32.totalorder %s813_s10, %s807_s8 }
  0x27   : > { %p810_p2 = pneg %p809_p1  ;;  %p816_p6 = por %p815_p5, %p814_p4 }
  0x29   : > { %p817_p7 = pnand %p816_p6, %p810_p2 }
  0xe3   : > { %v407_v3 = vpop.f32.mrf.mxu0 }
  0xe4   : > { %v411_v4 = vmul.f32 0.35355338, %v407_v3 }
  0xe5   : > { %v724_v5 = vpop.f32.mrf.mxu0 }
  0xe6   : > { %v412_v6 = vsel %vm334_vm1, %v411_v4, -inf }
  0xe7   : > { %413 = vmax.xlane.f32.xlu0 %v412_v6 }
 0x170   : > { %v414_v7 = vpop.xlane.xlu0 %413 }
 0x171   : > { %v415_v8 = vsub.f32 %v411_v4, %v414_v7 }
 0x173   : > { %v416_v9 = vmul.f32 1.442695, %v415_v8 }
 0x175   : > { %803 = vpow2.f32 %v416_v9 }
 0x182   : > { %v804_v10 = vpop.eup %803 }
 0x183   : > { %v418_v11 = vsel %vm334_vm1, %v804_v10, 0.0 }
 0x184   : > { %419 = vadd.xlane.f32.xlu0 %v418_v11 }
 0x20d   : > { %v420_v13 = vpop.xlane.xlu0 %419 }
 0x20e   : > { %805 = vrcp.f32 %v420_v13 }
 0x21b   : > { %v806_v14 = vpop.eup %805 }
 0x21c   : > { %v422_v15 = vmul.f32 %v806_v14, %v804_v10 }
 0x21e   : > { %728 = vmatmul.mubr.msk.f32.vlgmr.msra.gmra.mxu1 %vm334_vm1, %v422_v15  ;;  %423 = vst.msk [vmem:[%s280_s11] sm:$0xff] %vm334_vm1, %v422_v15 }
 0x21f   : > { %820 = shalt.err (!%p817_p7)
}
 0x220   : > { %s821_s18 = scalar_lea.hbm %s525_s5, 128  ;;  %s825_s11 = scalar_lea.hbm %s1078_s3, 1024 }
 0x221   : > { %p822_p9 = scmp.ne.s32.totalorder %s525_s5, %s821_s18  ;;  %p826_p12 = scmp.lt.s32.totalorder %s525_s5, %s1078_s3 }
 0x222   : > { %p827_p13 = scmp.lt.s32.totalorder %s825_s11, %s821_s18 }
 0x223   : > { %p823_p10 = pnand %p822_p9, %p980_p3 }
 0x224   : > { %p828_p0 = por %p827_p13, %p826_p12 }
 0x225   : > { %p824_p11 = pneg %p823_p10 }
 0x227   : > { %p829_p1 = pnand %p828_p0, %p824_p11 }
 0x229   : > { %832 = shalt.err (!%p829_p1)
}
 0x22a   : > { %730 = dma.vmem_to_hbm [thread:$0]  (%p980_p3), %s528_s24, 128, %s525_s5, %s500_s6  }
 0x22b   : > { %s331_s23 = scalar_lea.vmem %s1079_s4, %s1004_s12 }
 0x2de   : > { %v494_v16 = vpop.f32.mrf.mxu1 }
 0x2df   : > { %498 = vst.msk [vmem:[%s331_s23] sm:$0xff] %vm334_vm1, %v494_v16 }
 0x2e0   : > { %v729_v17 = vpop.f32.mrf.mxu1 }
 0x2e1 PF: > { %p736_p2 = scmp.ge.s32.totalorder %s899_s22, 2  ;;  %s542_s27 = sand.u32 1, %s871_s15  }
 0x2e2   : > { %s543_s28 = scalar_lea.sflag [#allocation3], %s542_s27 }
 0x2e3   : > { %p733_p4 = pnand %p736_p2, %p989_p8 }
 0x2e5   : > { %p734_p5 = pneg %p733_p4 }
 0x2e7   : > { %866 = dma.done.wait (%p734_p5), %s543_s28, 128  }
 0x2e8   : > { %868 = vsyncadd (%p734_p5), %s543_s28, 4294967168  ;;  %s18_s22 = sadd.s32 1, %s899_s22   ;;  %s1086_s15 = smov %s875_s16 }
 0x2e9   : > { %p15_p3 = scmp.ge.s32.totalorder %s18_s22, 10   ;;  %s1087_s16 = smov %s879_s17 }
 0x2ea   : > { %s1088_s17 = smov %s998_s7  ;;  %s1089_s18 = smov %s891_s20 }
 0x2eb   : > { %s1090_s19 = smov %s895_s21  ;;  %s1091_s20 = smov %s1094_s25 }
 0x2ec   : > { %s1092_s21 = smov %s1098_s26  ;;  %17 = sbr.rel (!%p15_p3) target bundleno = 8 (0x8), region = 85 }
 0x2f1   :  { %562 = vsyncpa [#allocation3], 1 }
 0x2f2   :  { %564 = vsyncpa [#allocation3 + $0x1], 1 }

// kernel: multi_head_attention.9
= control target key start
LH: loop header
LB: loop body
LE: loop exit
PB: predicated region body
PF: predicated region fallthrough
CT: control target
= control target key end

     0   :  { %vm28_vm0 = vcmask 261120   ;;  %s224_s0 = inlined_call_operand.vmem [shape: f32[16,32], index: 0, kind: input, shape index: {}]   ;;  %s225_s1 = inlined_call_operand.vmem [shape: f32[32,32], index: 1, kind: input, shape index: {}]   ;;  %s226_s2 = inlined_call_operand.vmem [shape: f32[1,32], index: 2, kind: input, shape index: {}]   ;;  %s227_s3 = inlined_call_operand.hbm [shape: f32[16,32], index: 3, kind: output, shape index: {}]  }
   0x1   :  { %v20_v0 = vld [vmem:[%s225_s1 + $0x18] sm:$0xff]  ;;  %v19_v1 = vld [vmem:[%s225_s1 + $0x10] sm:$0xff]  ;;  %v15_v2 = vld [vmem:[%s224_s0] sm:$0xff] }
   0x2   :  { %137 = vmatprep.subr.mxu0 %v20_v0  ;;  %v18_v3 = vld [vmem:[%s225_s1 + $0x8] sm:$0xff]  ;;  %145 = vmatprep.mubr.msk.f32.mxu0 %vm28_vm0, %v15_v2 }
   0x3   :  { %138 = vmatpush3.msra.mxu0 %v20_v0 }
   0x4   :  { %8 = vsyncpa [#allocation3], 0  ;;  %139 = vmatprep.subr.mxu0 %v19_v1  ;;  %v17_v4 = vld [vmem:[%s225_s1] sm:$0xff]  ;;  %v16_v5 = vld [vmem:[%s224_s0 + $0x8] sm:$0xff]  ;;  %s173_s26 = smov [#allocation2]  }
   0x5   :  { %140 = vmatpush3.msra.mxu0 %v19_v1  ;;  %v128_v6 = vld [vmem:[%s226_s2] ss:$0 sm:$0xff]  ;;  %s117_s27 = sshll.u32 %s173_s26, 4  ;;  %s118_s27 = int_to_ptr.vmem [resolvable:$true] %s117_s27 }
   0x6   :  { %141 = vmatprep.subr.mxu0 %v18_v3  ;;  %s151_s0 = scalar_lea.vmem %s118_s27, 256  ;;  %p156_p1 = scmp.lt.s32.totalorder %s118_s27, %s118_s27 }
   0x7   :  { %142 = vmatpush3.msra.mxu0 %v18_v3  ;;  %p152_p0 = scmp.ne.s32.totalorder %s118_s27, %s151_s0  ;;  %p157_p2 = scmp.lt.s32.totalorder %s151_s0, %s151_s0 }
   0x8   :  { %143 = vmatprep.subr.mxu0 %v17_v4 }
   0x9   :  { %144 = vmatpush3.msra.mxu0 %v17_v4  ;;  %p158_p3 = por %p157_p2, %p156_p1 }
   0xa   :  { %146 = vmatmul.mubr.msk.f32.vlgmr.msra.gmra.mxu0 %vm28_vm0, %v16_v5 }
   0xb   :  { %p159_p4 = pnand %p158_p3, %p152_p0 }
  0xca   :  { %v147_v7 = vpop.f32.mrf.mxu0 }
  0xcb   :  { %v107_v8 = vadd.f32 %v147_v7, %v128_v6 }
  0xcc   :  { %v101_v9 = vpop.f32.mrf.mxu0 }
  0xcd   :  { %111 = vst.msk [vmem:[#allocation2 + $0x8] sm:$0xff] %vm28_vm0, %v107_v8  ;;  %v102_v10 = vadd.f32 %v128_v6, %v101_v9 }
  0xcf   :  { %110 = vst.msk [vmem:[#allocation2] sm:$0xff] %vm28_vm0, %v102_v10 }
  0xd0   :  { %162 = shalt.err (!%p159_p4)
}
  0xd1   :  { %s174_s1 = smov 128   ;;  %s175_s2 = smov 8  }
  0xd2   :  { %123 = dma.vmem_to_hbm [thread:$0]  %s118_s27, 256, %s227_s3, [#allocation3], %s174_s1, %s174_s1, %s175_s2  }
  0xd3   :  { %171 = dma.done.wait [#allocation3], 256  }
  0xd4   :  { %172 = vsyncadd [#allocation3], 4294967040 }
  0xd5   :  { %127 = vsyncpa [#allocation3], 1 }

</bundles_post_ra>
